<compile_context>
chip_gen: v7x
topology: tpu7x:2x2x1
jax: 0.10.0
libtpu: 0.0.40
codegen_flags: <defaults>
</compile_context>

<pallas_src>
import numpy as np
import jax
import jax.numpy as jnp
from jax.experimental import pallas as pl
from jax.experimental.pallas import tpu as pltpu


# --------------------------------------------------------------------------- #
# VMEM / batch-tile sizing helpers
# --------------------------------------------------------------------------- #
def _vmem_bytes_estimate(tb, lq, lk, d, dh):
    """Rough per-grid-step VMEM bytes: pipelined tiles + weights + f32 temps."""
    f32, bf16 = 4, 2
    # Double-buffered activation tiles (q f32, k/v bf16, out f32).
    tiles = 2 * (tb * lq * d * f32 + 2 * tb * lk * d * bf16 + tb * lq * d * f32)
    # Grid-invariant weights (still double-buffered by default) + packed vecs.
    weights = 2 * ((2 * d * d + 4 * d * dh) * bf16 + 4 * d * f32)
    # f32 intermediates: qp/kp/output/g1/g2-ish slabs, scores + e, h1/h2, final.
    inter = f32 * (tb * lq * d * 6 + tb * lk * d + 2 * tb * lq * lk
                   + 2 * tb * lq * dh)
    return tiles + weights + inter


def _choose_tb(B, Lq, Lk, D, Dh, vmem_budget_bytes=24 * 2**20, max_tb=None):
    """Pick the batch tile.

    Preferences (in order): fit the conservative VMEM budget; keep >= 2
    (ideally an even number of) grid steps so v7x's two TensorCores can share
    the 'parallel' axis; keep tb*Lq sublane-aligned; then as large as possible
    to fill the MXU M dimension. tb always divides B (tb=1 fallback for prime
    B is correct, just MXU-underfilled).
    """
    divisors = [d for d in range(1, B + 1) if B % d == 0]
    cands = [d for d in divisors
             if _vmem_bytes_estimate(d, Lq, Lk, D, Dh) <= vmem_budget_bytes] or [1]
    if max_tb is not None:
        cands = [d for d in cands if d <= max_tb] or [min(cands)]
    multi = [d for d in cands if B // d >= 2] or cands          # >=2 grid steps
    even = [d for d in multi if (B // d) % 2 == 0] or multi      # even for 2 TCs
    aligned = [d for d in even if (d * Lq) % 8 == 0] or even     # sublane align
    return max(aligned)


# --------------------------------------------------------------------------- #
# Kernel
# --------------------------------------------------------------------------- #
def make_siamese_attention_kernel(tb: int, lq: int, lk: int, d: int, dh: int):
    inv_temp = float(1.0 / np.power(d, 0.5))

    def kernel(q_ref, k_ref, v_ref,
               wqk_t_ref, w1_t_ref, w2_t_ref,
               w3a_t_ref, w3b_t_ref, w3c_t_ref,
               vecs_ref, o_ref):
        q2 = q_ref[...].reshape(tb * lq, d)      # f32 residual slab
        k2 = k_ref[...].reshape(tb * lk, d)      # bf16 (cast in the wrapper)

        vecs = vecs_ref[...]                     # (4, d) f32: dummy, b1, b2, b3

        # ---- Siamese Q/K projection: two dots sharing the same MXU RHS ------
        wqk = wqk_t_ref[...]                     # (d, d) bf16
        qp = jnp.dot(q2.astype(jnp.bfloat16), wqk,
                     preferred_element_type=jnp.float32) * inv_temp  # fold 1/T
        kp = jnp.dot(k2, wqk, preferred_element_type=jnp.float32)

        qp3 = qp.reshape(tb, lq, d)
        kp3 = kp.reshape(tb, lk, d)

        # ---- scores: batched contraction over last dims (no transpose) ------
        scores = jnp.einsum("bqd,bkd->bqk",
                            qp3.astype(jnp.bfloat16), kp3.astype(jnp.bfloat16),
                            preferred_element_type=jnp.float32)      # (tb,lq,lk)

        # Dummy-key logit on the VPU/XLU; its value row is zero so it only
        # affects the softmax normalization.
        dummy = vecs[0:1, :].reshape(1, 1, d)
        score_d = jnp.sum(qp3 * dummy, axis=-1, keepdims=True)       # (tb,lq,1)

        # ---- softmax over [scores | dummy] in f32 ----------------------------
        m = jnp.maximum(jnp.max(scores, axis=-1, keepdims=True), score_d)
        e = jnp.exp(scores - m)                                       # (tb,lq,lk)
        e_d = jnp.exp(score_d - m)                                    # (tb,lq,1)
        denom = jnp.sum(e, axis=-1, keepdims=True) + e_d

        num = jnp.einsum("bqk,bkd->bqd",
                         e.astype(jnp.bfloat16), v_ref[...],
                         preferred_element_type=jnp.float32)          # (tb,lq,d)
        # Exact reciprocal: only tb*lq values, exactness is essentially free.
        output = num * pl.reciprocal(denom, approx=False)

        # ---- position-wise epilogue on the flattened (tb*lq, d) slab ---------
        out2d = output.reshape(tb * lq, d)
        g1 = (out2d * q2).astype(jnp.bfloat16)        # output * residual
        g2 = (q2 - out2d).astype(jnp.bfloat16)        # residual - output

        b1 = vecs[1:2, :dh]
        b2 = vecs[2:3, :dh]
        b3 = vecs[3:4, :]

        h1 = jnp.maximum(jnp.dot(g1, w1_t_ref[...],
                                 preferred_element_type=jnp.float32) + b1, 0.0)
        h2 = jnp.maximum(jnp.dot(g2, w2_t_ref[...],
                                 preferred_element_type=jnp.float32) + b2, 0.0)

        # linear3(concat([h1, h2, residual], -1)) as a split matmul (W3 pre-split
        # column-wise in the wrapper -> no in-kernel lane concat).
        final = (jnp.dot(h1.astype(jnp.bfloat16), w3a_t_ref[...],
                         preferred_element_type=jnp.float32)
                 + jnp.dot(h2.astype(jnp.bfloat16), w3b_t_ref[...],
                           preferred_element_type=jnp.float32)
                 + jnp.dot(q2.astype(jnp.bfloat16), w3c_t_ref[...],
                           preferred_element_type=jnp.float32)
                 + b3)                                                # (tb*lq, d)

        o_ref[...] = final.reshape(tb, lq, d).astype(o_ref.dtype)

    return kernel


# --------------------------------------------------------------------------- #
# Wrapper
# --------------------------------------------------------------------------- #
def single_head_siamese_attention(q, k, v, params):
    """q: (B, Lq, D), k: (B, Lk, D), v: (B, Lk, D) -> (B, Lq, D)."""
    B, Lq, D = q.shape
    _, Lk, _ = k.shape
    assert D % 2 == 0, "d_model must be even (matches PyTorch linear3 sizing)"
    Dh = D // 2

    tb = _choose_tb(B, Lq, Lk, D, Dh)

    w_qk = params["w_qk"]        # (D, D)   (out, in) like nn.Linear
    dummy = params["dummy"]      # (1, D)
    w1, b1 = params["w1"], params["b1"]   # (Dh, D), (Dh,)
    w2, b2 = params["w2"], params["b2"]   # (Dh, D), (Dh,)
    w3, b3 = params["w3"], params["b3"]   # (D, 2D), (D,)

    # Pre-transpose / pre-split / bf16-cast weights (f32 MXU accumulation).
    wqk_t = w_qk.T.astype(jnp.bfloat16)            # (D, D)
    w1_t = w1.T.astype(jnp.bfloat16)               # (D, Dh)
    w2_t = w2.T.astype(jnp.bfloat16)               # (D, Dh)
    w3_t = w3.T                                    # (2D, D)
    w3a_t = w3_t[:Dh, :].astype(jnp.bfloat16)      # multiplies h1
    w3b_t = w3_t[Dh:2 * Dh, :].astype(jnp.bfloat16)  # multiplies h2
    w3c_t = w3_t[2 * Dh:, :].astype(jnp.bfloat16)  # multiplies residual

    # Pack the small vectors (dummy key, biases) into one (4, D) f32 operand.
    vecs = jnp.zeros((4, D), jnp.float32)
    vecs = vecs.at[0, :].set(dummy.reshape(D).astype(jnp.float32))
    vecs = vecs.at[1, :Dh].set(b1.astype(jnp.float32))
    vecs = vecs.at[2, :Dh].set(b2.astype(jnp.float32))
    vecs = vecs.at[3, :].set(b3.astype(jnp.float32))

    # k/v are only ever consumed as bf16 MXU operands -> ship them as bf16.
    k_bf = k.astype(jnp.bfloat16)
    v_bf = v.astype(jnp.bfloat16)

    kernel = make_siamese_attention_kernel(tb, Lq, Lk, D, Dh)

    def invariant_spec(arr):
        nd = arr.ndim
        return pl.BlockSpec(arr.shape, lambda b, _nd=nd: (0,) * _nd)

    grid_spec = pltpu.PrefetchScalarGridSpec(
        num_scalar_prefetch=0,
        grid=(B // tb,),
        in_specs=[
            pl.BlockSpec((tb, Lq, D), lambda b: (b, 0, 0)),   # q (f32 residual)
            pl.BlockSpec((tb, Lk, D), lambda b: (b, 0, 0)),   # k (bf16)
            pl.BlockSpec((tb, Lk, D), lambda b: (b, 0, 0)),   # v (bf16)
            invariant_spec(wqk_t),
            invariant_spec(w1_t), invariant_spec(w2_t),
            invariant_spec(w3a_t), invariant_spec(w3b_t), invariant_spec(w3c_t),
            invariant_spec(vecs),
        ],
        out_specs=pl.BlockSpec((tb, Lq, D), lambda b: (b, 0, 0)),
    )

    # Advisory cost estimate so XLA schedules around the kernel sensibly.
    flops = (2 * B * (Lq + Lk) * D * D            # shared Q/K projection
             + 2 * B * Lq * Lk * D                # scores
             + 2 * B * Lq * D                     # dummy logit
             + 2 * B * Lq * Lk * D                # PV
             + 2 * 2 * B * Lq * D * Dh            # w1, w2
             + 2 * B * Lq * (2 * Dh + D) * D)     # split w3
    transcendentals = B * Lq * (Lk + 1)
    bytes_accessed = (q.size * 4 + k_bf.size * 2 + v_bf.size * 2
                      + B * Lq * D * 4
                      + 2 * (wqk_t.size + w1_t.size + w2_t.size
                             + w3a_t.size + w3b_t.size + w3c_t.size)
                      + vecs.size * 4)

    # Computed VMEM budget with headroom, capped below v7x's 64 MiB physical.
    est = _vmem_bytes_estimate(tb, Lq, Lk, D, Dh)
    vmem_limit = int(min(48 * 2**20, max(32 * 2**20, 2 * est + (4 << 20))))

    out = pl.pallas_call(
        kernel,
        out_shape=jax.ShapeDtypeStruct((B, Lq, D), q.dtype),
        grid_spec=grid_spec,
        compiler_params=pltpu.CompilerParams(
            dimension_semantics=("parallel",),
            vmem_limit_bytes=vmem_limit),
        cost_estimate=pl.CostEstimate(
            flops=int(flops),
            transcendentals=int(transcendentals),
            bytes_accessed=int(bytes_accessed)),
    )(q, k_bf, v_bf, wqk_t, w1_t, w2_t, w3a_t, w3b_t, w3c_t, vecs)

    return out


# --------------------------------------------------------------------------- #
# Pure-JAX reference & params (mirror the PyTorch forward exactly)
# --------------------------------------------------------------------------- #
def reference_forward(q, k, v, params):
    B, Lq, D = q.shape
    residual = q
    qp = q @ params["w_qk"].T
    kp = k @ params["w_qk"].T
    dummy = jnp.broadcast_to(params["dummy"].reshape(1, 1, D), (B, 1, D))
    dummy_v = jnp.zeros((B, 1, D), q.dtype)
    k_full = jnp.concatenate([kp, dummy], axis=1)
    v_full = jnp.concatenate([v, dummy_v], axis=1)
    attn = jnp.einsum("bqd,bkd->bqk", qp, k_full) / np.power(D, 0.5)
    attn = jax.nn.softmax(attn, axis=2)
    output = jnp.einsum("bqk,bkd->bqd", attn, v_full)
    out1 = jax.nn.relu(output * residual @ params["w1"].T + params["b1"])
    out2 = jax.nn.relu((residual - output) @ params["w2"].T + params["b2"])
    cat = jnp.concatenate([out1, out2, residual], axis=2)
    return cat @ params["w3"].T + params["b3"]


def init_params(key, d_model):
    ks = jax.random.split(key, 8)
    Dh = d_model // 2
    std_qk = np.sqrt(2.0 / (d_model + d_model))
    return {
        "w_qk": jax.random.normal(ks[0], (d_model, d_model), jnp.float32) * std_qk,
        "dummy": jax.random.normal(ks[1], (1, d_model), jnp.float32),
        "w1": jax.random.normal(ks[2], (Dh, d_model), jnp.float32) * 0.1,
        "b1": jax.random.normal(ks[3], (Dh,), jnp.float32) * 0.1,
        "w2": jax.random.normal(ks[4], (Dh, d_model), jnp.float32) * 0.1,
        "b2": jax.random.normal(ks[5], (Dh,), jnp.float32) * 0.1,
        "w3": jax.random.normal(ks[6], (d_model, 2 * d_model), jnp.float32) * 0.1,
        "b3": jax.random.normal(ks[7], (d_model,), jnp.float32) * 0.1,
    }


if __name__ == "__main__":
    B, Lq, Lk, D = 2, 8, 8, 32
    key = jax.random.PRNGKey(0)
    kq, kk, kv, kparam = jax.random.split(key, 4)

    q = jax.random.normal(kq, (B, Lq, D), jnp.float32)
    k = jax.random.normal(kk, (B, Lk, D), jnp.float32)
    v = jax.random.normal(kv, (B, Lk, D), jnp.float32)
    params = init_params(kparam, D)

    out = single_head_siamese_attention(q, k, v, params)
    out = jax.block_until_ready(out)

    ref = reference_forward(q, k, v, params)
    # bf16 MXU operands (f32 accumulation) vs. the pure-f32 reference => loosened tolerance.
    np.testing.assert_allclose(np.asarray(out), np.asarray(ref),
                               rtol=5e-2, atol=1e-1)
    print("KERNEL_OK")
</pallas_src>

<mosaic_0001>
module attributes {stable_mosaic.version = 11 : i64} {
  func.func @kernel(%arg0: i32, %arg1: memref<1x8x32xf32, #tpu.memory_space<vmem>>, %arg2: memref<1x8x32xbf16, #tpu.memory_space<vmem>>, %arg3: memref<1x8x32xbf16, #tpu.memory_space<vmem>>, %arg4: memref<32x32xbf16, #tpu.memory_space<vmem>>, %arg5: memref<32x16xbf16, #tpu.memory_space<vmem>>, %arg6: memref<32x16xbf16, #tpu.memory_space<vmem>>, %arg7: memref<16x32xbf16, #tpu.memory_space<vmem>>, %arg8: memref<16x32xbf16, #tpu.memory_space<vmem>>, %arg9: memref<32x32xbf16, #tpu.memory_space<vmem>>, %arg10: memref<4x32xf32, #tpu.memory_space<vmem>>, %arg11: memref<1x8x32xf32, #tpu.memory_space<vmem>>) attributes {dimension_semantics = [#tpu.dimension_semantics<parallel>], iteration_bounds = array<i64: 2>, scalar_prefetch = 0 : i64, scratch_operands = 0 : i64, tpu.core_type = #tpu.core_type<tc>, window_params = [{transform_indices = @transform_0, window_bounds = array<i64: 1, 8, 32>}, {transform_indices = @transform_1, window_bounds = array<i64: 1, 8, 32>}, {transform_indices = @transform_2, window_bounds = array<i64: 1, 8, 32>}, {pipeline_mode = #tpu.pipeline_mode<synchronous>, transform_indices = @transform_3, window_bounds = array<i64: 32, 32>}, {pipeline_mode = #tpu.pipeline_mode<synchronous>, transform_indices = @transform_4, window_bounds = array<i64: 32, 16>}, {pipeline_mode = #tpu.pipeline_mode<synchronous>, transform_indices = @transform_5, window_bounds = array<i64: 32, 16>}, {pipeline_mode = #tpu.pipeline_mode<synchronous>, transform_indices = @transform_6, window_bounds = array<i64: 16, 32>}, {pipeline_mode = #tpu.pipeline_mode<synchronous>, transform_indices = @transform_7, window_bounds = array<i64: 16, 32>}, {pipeline_mode = #tpu.pipeline_mode<synchronous>, transform_indices = @transform_8, window_bounds = array<i64: 32, 32>}, {pipeline_mode = #tpu.pipeline_mode<synchronous>, transform_indices = @transform_9, window_bounds = array<i64: 4, 32>}, {transform_indices = @transform_10, window_bounds = array<i64: 1, 8, 32>}]} {
    %c0 = arith.constant 0 : index
    %c0_0 = arith.constant 0 : index
    %c0_1 = arith.constant 0 : index
    %0 = vector.load %arg1[%c0, %c0_0, %c0_1] : memref<1x8x32xf32, #tpu.memory_space<vmem>>, vector<1x8x32xf32>
    %1 = vector.shape_cast %0 : vector<1x8x32xf32> to vector<8x32xf32>
    %c0_2 = arith.constant 0 : index
    %c0_3 = arith.constant 0 : index
    %c0_4 = arith.constant 0 : index
    %2 = vector.load %arg2[%c0_2, %c0_3, %c0_4] : memref<1x8x32xbf16, #tpu.memory_space<vmem>>, vector<1x8x32xbf16>
    %3 = vector.shape_cast %2 : vector<1x8x32xbf16> to vector<8x32xbf16>
    %c0_5 = arith.constant 0 : index
    %c0_6 = arith.constant 0 : index
    %4 = vector.load %arg10[%c0_5, %c0_6] : memref<4x32xf32, #tpu.memory_space<vmem>>, vector<4x32xf32>
    %c0_7 = arith.constant 0 : index
    %c0_8 = arith.constant 0 : index
    %5 = vector.load %arg4[%c0_7, %c0_8] : memref<32x32xbf16, #tpu.memory_space<vmem>>, vector<32x32xbf16>
    %6 = arith.truncf %1 : vector<8x32xf32> to vector<8x32xbf16>
    %cst = arith.constant dense<0.000000e+00> : vector<8x32xf32>
    %7 = tpu.matmul %6, %5, %cst {dimension_numbers = #tpu.dot_dimension_numbers<[1], [0], [0], [1], [0, 0, 1, 1], [], []>} : vector<8x32xbf16>, vector<32x32xbf16>, vector<8x32xf32> -> vector<8x32xf32>
    %cst_9 = arith.constant 0.176776692 : f32
    %8 = vector.broadcast %cst_9 : f32 to vector<8x32xf32>
    %9 = arith.mulf %7, %8 : vector<8x32xf32>
    %cst_10 = arith.constant dense<0.000000e+00> : vector<8x32xf32>
    %10 = tpu.matmul %3, %5, %cst_10 {dimension_numbers = #tpu.dot_dimension_numbers<[1], [0], [0], [1], [0, 0, 1, 1], [], []>} : vector<8x32xbf16>, vector<32x32xbf16>, vector<8x32xf32> -> vector<8x32xf32>
    %11 = vector.shape_cast %9 : vector<8x32xf32> to vector<1x8x32xf32>
    %12 = vector.shape_cast %10 : vector<8x32xf32> to vector<1x8x32xf32>
    %13 = arith.truncf %11 : vector<1x8x32xf32> to vector<1x8x32xbf16>
    %14 = arith.truncf %12 : vector<1x8x32xf32> to vector<1x8x32xbf16>
    "tpu.trace_start"() <{level = 10 : i32, message = "bqd,bkd->bqk"}> : () -> ()
    %cst_11 = arith.constant dense<0.000000e+00> : vector<1x8x8xf32>
    %15 = tpu.matmul %13, %14, %cst_11 {dimension_numbers = #tpu.dot_dimension_numbers<[2], [2], [1], [1], [0, 0, 0, 1, 1, 1], [0], [0]>} : vector<1x8x32xbf16>, vector<1x8x32xbf16>, vector<1x8x8xf32> -> vector<1x8x8xf32>
    "tpu.trace_stop"() : () -> ()
    %16 = vector.extract_strided_slice %4 {offsets = [0, 0], sizes = [1, 32], strides = [1, 1]} : vector<4x32xf32> to vector<1x32xf32>
    %17 = vector.shape_cast %16 : vector<1x32xf32> to vector<1x1x32xf32>
    %18 = vector.broadcast %17 : vector<1x1x32xf32> to vector<1x8x32xf32>
    %19 = arith.mulf %11, %18 : vector<1x8x32xf32>
    %cst_12 = arith.constant dense<0.000000e+00> : vector<1x8xf32>
    %20 = vector.multi_reduction <add>, %19, %cst_12 [2] : vector<1x8x32xf32> to vector<1x8xf32>
    %21 = vector.shape_cast %20 : vector<1x8xf32> to vector<1x8x1xf32>
    %cst_13 = arith.constant dense<0xFF800000> : vector<1x8xf32>
    %22 = vector.multi_reduction <maximumf>, %15, %cst_13 [2] : vector<1x8x8xf32> to vector<1x8xf32>
    %23 = vector.shape_cast %22 : vector<1x8xf32> to vector<1x8x1xf32>
    %24 = arith.maximumf %23, %21 : vector<1x8x1xf32>
    %25 = vector.broadcast %24 : vector<1x8x1xf32> to vector<1x8x8xf32>
    %26 = arith.subf %15, %25 : vector<1x8x8xf32>
    %27 = math.exp %26 : vector<1x8x8xf32>
    %28 = arith.subf %21, %24 : vector<1x8x1xf32>
    %29 = math.exp %28 : vector<1x8x1xf32>
    %cst_14 = arith.constant dense<0.000000e+00> : vector<1x8xf32>
    %30 = vector.multi_reduction <add>, %27, %cst_14 [2] : vector<1x8x8xf32> to vector<1x8xf32>
    %31 = vector.shape_cast %30 : vector<1x8xf32> to vector<1x8x1xf32>
    %32 = arith.addf %31, %29 : vector<1x8x1xf32>
    %33 = arith.truncf %27 : vector<1x8x8xf32> to vector<1x8x8xbf16>
    %c0_15 = arith.constant 0 : index
    %c0_16 = arith.constant 0 : index
    %c0_17 = arith.constant 0 : index
    %34 = vector.load %arg3[%c0_15, %c0_16, %c0_17] : memref<1x8x32xbf16, #tpu.memory_space<vmem>>, vector<1x8x32xbf16>
    "tpu.trace_start"() <{level = 10 : i32, message = "bqk,bkd->bqd"}> : () -> ()
    %cst_18 = arith.constant dense<0.000000e+00> : vector<1x8x32xf32>
    %35 = tpu.matmul %33, %34, %cst_18 {dimension_numbers = #tpu.dot_dimension_numbers<[2], [1], [1], [2], [0, 0, 0, 1, 1, 2], [0], [0]>} : vector<1x8x8xbf16>, vector<1x8x32xbf16>, vector<1x8x32xf32> -> vector<1x8x32xf32>
    "tpu.trace_stop"() : () -> ()
    %36 = tpu.reciprocal %32 : vector<1x8x1xf32> -> vector<1x8x1xf32>
    %37 = vector.broadcast %36 : vector<1x8x1xf32> to vector<1x8x32xf32>
    %38 = arith.mulf %35, %37 : vector<1x8x32xf32>
    %39 = vector.shape_cast %38 : vector<1x8x32xf32> to vector<8x32xf32>
    %40 = arith.mulf %39, %1 : vector<8x32xf32>
    %41 = arith.truncf %40 : vector<8x32xf32> to vector<8x32xbf16>
    %42 = arith.subf %1, %39 : vector<8x32xf32>
    %43 = arith.truncf %42 : vector<8x32xf32> to vector<8x32xbf16>
    %44 = vector.extract_strided_slice %4 {offsets = [1, 0], sizes = [1, 16], strides = [1, 1]} : vector<4x32xf32> to vector<1x16xf32>
    %45 = vector.extract_strided_slice %4 {offsets = [2, 0], sizes = [1, 16], strides = [1, 1]} : vector<4x32xf32> to vector<1x16xf32>
    %46 = vector.extract_strided_slice %4 {offsets = [3, 0], sizes = [1, 32], strides = [1, 1]} : vector<4x32xf32> to vector<1x32xf32>
    %c0_19 = arith.constant 0 : index
    %c0_20 = arith.constant 0 : index
    %47 = vector.load %arg5[%c0_19, %c0_20] : memref<32x16xbf16, #tpu.memory_space<vmem>>, vector<32x16xbf16>
    %cst_21 = arith.constant dense<0.000000e+00> : vector<8x16xf32>
    %48 = tpu.matmul %41, %47, %cst_21 {dimension_numbers = #tpu.dot_dimension_numbers<[1], [0], [0], [1], [0, 0, 1, 1], [], []>} : vector<8x32xbf16>, vector<32x16xbf16>, vector<8x16xf32> -> vector<8x16xf32>
    %49 = vector.broadcast %44 : vector<1x16xf32> to vector<8x16xf32>
    %50 = arith.addf %48, %49 : vector<8x16xf32>
    %cst_22 = arith.constant 0.000000e+00 : f32
    %51 = vector.broadcast %cst_22 : f32 to vector<8x16xf32>
    %52 = arith.maximumf %50, %51 : vector<8x16xf32>
    %c0_23 = arith.constant 0 : index
    %c0_24 = arith.constant 0 : index
    %53 = vector.load %arg6[%c0_23, %c0_24] : memref<32x16xbf16, #tpu.memory_space<vmem>>, vector<32x16xbf16>
    %cst_25 = arith.constant dense<0.000000e+00> : vector<8x16xf32>
    %54 = tpu.matmul %43, %53, %cst_25 {dimension_numbers = #tpu.dot_dimension_numbers<[1], [0], [0], [1], [0, 0, 1, 1], [], []>} : vector<8x32xbf16>, vector<32x16xbf16>, vector<8x16xf32> -> vector<8x16xf32>
    %55 = vector.broadcast %45 : vector<1x16xf32> to vector<8x16xf32>
    %56 = arith.addf %54, %55 : vector<8x16xf32>
    %cst_26 = arith.constant 0.000000e+00 : f32
    %57 = vector.broadcast %cst_26 : f32 to vector<8x16xf32>
    %58 = arith.maximumf %56, %57 : vector<8x16xf32>
    %59 = arith.truncf %52 : vector<8x16xf32> to vector<8x16xbf16>
    %c0_27 = arith.constant 0 : index
    %c0_28 = arith.constant 0 : index
    %60 = vector.load %arg7[%c0_27, %c0_28] : memref<16x32xbf16, #tpu.memory_space<vmem>>, vector<16x32xbf16>
    %cst_29 = arith.constant dense<0.000000e+00> : vector<8x32xf32>
    %61 = tpu.matmul %59, %60, %cst_29 {dimension_numbers = #tpu.dot_dimension_numbers<[1], [0], [0], [1], [0, 0, 1, 1], [], []>} : vector<8x16xbf16>, vector<16x32xbf16>, vector<8x32xf32> -> vector<8x32xf32>
    %62 = arith.truncf %58 : vector<8x16xf32> to vector<8x16xbf16>
    %c0_30 = arith.constant 0 : index
    %c0_31 = arith.constant 0 : index
    %63 = vector.load %arg8[%c0_30, %c0_31] : memref<16x32xbf16, #tpu.memory_space<vmem>>, vector<16x32xbf16>
    %cst_32 = arith.constant dense<0.000000e+00> : vector<8x32xf32>
    %64 = tpu.matmul %62, %63, %cst_32 {dimension_numbers = #tpu.dot_dimension_numbers<[1], [0], [0], [1], [0, 0, 1, 1], [], []>} : vector<8x16xbf16>, vector<16x32xbf16>, vector<8x32xf32> -> vector<8x32xf32>
    %65 = arith.addf %61, %64 : vector<8x32xf32>
    %66 = arith.truncf %1 : vector<8x32xf32> to vector<8x32xbf16>
    %c0_33 = arith.constant 0 : index
    %c0_34 = arith.constant 0 : index
    %67 = vector.load %arg9[%c0_33, %c0_34] : memref<32x32xbf16, #tpu.memory_space<vmem>>, vector<32x32xbf16>
    %cst_35 = arith.constant dense<0.000000e+00> : vector<8x32xf32>
    %68 = tpu.matmul %66, %67, %cst_35 {dimension_numbers = #tpu.dot_dimension_numbers<[1], [0], [0], [1], [0, 0, 1, 1], [], []>} : vector<8x32xbf16>, vector<32x32xbf16>, vector<8x32xf32> -> vector<8x32xf32>
    %69 = arith.addf %65, %68 : vector<8x32xf32>
    %70 = vector.broadcast %46 : vector<1x32xf32> to vector<8x32xf32>
    %71 = arith.addf %69, %70 : vector<8x32xf32>
    %72 = vector.shape_cast %71 : vector<8x32xf32> to vector<1x8x32xf32>
    %c0_36 = arith.constant 0 : index
    %c0_37 = arith.constant 0 : index
    %c0_38 = arith.constant 0 : index
    %73 = vector.load %arg11[%c0_36, %c0_37, %c0_38] : memref<1x8x32xf32, #tpu.memory_space<vmem>>, vector<1x8x32xf32>
    tpu.vector_store %arg11[%c0_36, %c0_37, %c0_38], %72 {strides = array<i32>} : memref<1x8x32xf32, #tpu.memory_space<vmem>>, vector<1x8x32xf32>,
    return
  }
  func.func @transform_0(%arg0: i32) -> (i32, i32, i32) {
    %c0_i32 = arith.constant 0 : i32
    %c0_i32_0 = arith.constant 0 : i32
    %c0_i32_1 = arith.constant 0 : i32
    return %arg0, %c0_i32, %c0_i32_0 : i32, i32, i32
  }
  func.func @transform_1(%arg0: i32) -> (i32, i32, i32) {
    %c0_i32 = arith.constant 0 : i32
    %c0_i32_0 = arith.constant 0 : i32
    %c0_i32_1 = arith.constant 0 : i32
    return %arg0, %c0_i32, %c0_i32_0 : i32, i32, i32
  }
  func.func @transform_2(%arg0: i32) -> (i32, i32, i32) {
    %c0_i32 = arith.constant 0 : i32
    %c0_i32_0 = arith.constant 0 : i32
    %c0_i32_1 = arith.constant 0 : i32
    return %arg0, %c0_i32, %c0_i32_0 : i32, i32, i32
  }
  func.func @transform_3(%arg0: i32) -> (i32, i32) {
    %c0_i32 = arith.constant 0 : i32
    %c0_i32_0 = arith.constant 0 : i32
    %c0_i32_1 = arith.constant 0 : i32
    return %c0_i32, %c0_i32_0 : i32, i32
  }
  func.func @transform_4(%arg0: i32) -> (i32, i32) {
    %c0_i32 = arith.constant 0 : i32
    %c0_i32_0 = arith.constant 0 : i32
    %c0_i32_1 = arith.constant 0 : i32
    return %c0_i32, %c0_i32_0 : i32, i32
  }
  func.func @transform_5(%arg0: i32) -> (i32, i32) {
    %c0_i32 = arith.constant 0 : i32
    %c0_i32_0 = arith.constant 0 : i32
    %c0_i32_1 = arith.constant 0 : i32
    return %c0_i32, %c0_i32_0 : i32, i32
  }
  func.func @transform_6(%arg0: i32) -> (i32, i32) {
    %c0_i32 = arith.constant 0 : i32
    %c0_i32_0 = arith.constant 0 : i32
    %c0_i32_1 = arith.constant 0 : i32
    return %c0_i32, %c0_i32_0 : i32, i32
  }
  func.func @transform_7(%arg0: i32) -> (i32, i32) {
    %c0_i32 = arith.constant 0 : i32
    %c0_i32_0 = arith.constant 0 : i32
    %c0_i32_1 = arith.constant 0 : i32
    return %c0_i32, %c0_i32_0 : i32, i32
  }
  func.func @transform_8(%arg0: i32) -> (i32, i32) {
    %c0_i32 = arith.constant 0 : i32
    %c0_i32_0 = arith.constant 0 : i32
    %c0_i32_1 = arith.constant 0 : i32
    return %c0_i32, %c0_i32_0 : i32, i32
  }
  func.func @transform_9(%arg0: i32) -> (i32, i32) {
    %c0_i32 = arith.constant 0 : i32
    %c0_i32_0 = arith.constant 0 : i32
    %c0_i32_1 = arith.constant 0 : i32
    return %c0_i32, %c0_i32_0 : i32, i32
  }
  func.func @transform_10(%arg0: i32) -> (i32, i32, i32) {
    %c0_i32 = arith.constant 0 : i32
    %c0_i32_0 = arith.constant 0 : i32
    %c0_i32_1 = arith.constant 0 : i32
    return %arg0, %c0_i32, %c0_i32_0 : i32, i32, i32
  }
}

</mosaic_0001>

<bundles_post_ra>
// kernel: tpu_custom_call.1
= control target key start
LH: loop header
LB: loop body
LE: loop exit
PB: predicated region body
PF: predicated region fallthrough
CT: control target
= control target key end

     0   :  { %s1870_s0 = inlined_call_operand.vmem [shape: f32[2,8,32], index: 0, kind: input, shape index: {}]   ;;  %s1871_s1 = inlined_call_operand.hbm [shape: bf16[2,8,32], index: 1, kind: input, shape index: {}]   ;;  %s1872_s2 = inlined_call_operand.hbm [shape: bf16[2,8,32], index: 2, kind: input, shape index: {}]   ;;  %s1873_s3 = inlined_call_operand.vmem [shape: bf16[32,32], index: 3, kind: input, shape index: {}]   ;;  %s1874_s4 = inlined_call_operand.vmem [shape: bf16[32,16], index: 4, kind: input, shape index: {}]   ;;  %s1875_s5 = inlined_call_operand.vmem [shape: bf16[32,16], index: 5, kind: input, shape index: {}]   ;;  %s1876_s6 = inlined_call_operand.hbm [shape: bf16[16,32], index: 6, kind: input, shape index: {}]   ;;  %s1877_s7 = inlined_call_operand.vmem [shape: bf16[16,32], index: 7, kind: input, shape index: {}]   ;;  %s1878_s8 = inlined_call_operand.vmem [shape: bf16[32,32], index: 8, kind: input, shape index: {}]   ;;  %s1879_s9 = inlined_call_operand.vmem [shape: f32[4,32], index: 9, kind: input, shape index: {}]   ;;  %s1880_s10 = inlined_call_operand.hbm [shape: f32[2,8,32], index: 10, kind: output, shape index: {}]  }
   0x1   :  { %1891 = sst [smem:[#allocation18_spill]] %s1876_s6 }
   0x2   :  { %1892 = sst [smem:[#allocation19_spill]] %s1880_s10 }
   0x3   :  { %15 = vsyncpa [#allocation3], 0 }
   0x4   :  { %17 = vsyncpa [#allocation3 + $0x1], 0 }
   0x5   :  { %18 = vsyncpa [#allocation6], 0 }
   0x6   :  { %20 = vsyncpa [#allocation6 + $0x1], 0 }
   0x7   :  { %21 = vsyncpa [#allocation4], 0 }
   0x8   :  { %23 = vsyncpa [#allocation4 + $0x1], 0  ;;  %s1535_s13 = smov 0   ;;  %s1537_s14 = smov 0  }
   0x9   :  { %s1539_s15 = smov 0   ;;  %s1541_s16 = smov 0  }
   0xa LB: > { %1893 = sst [smem:[#allocation13_spill]] %s1458_s13  ;;  %s1556_s17 = sadd.s32 4294967295, %s1470_s16   ;;  %s1470_s16 = sphi %s1541_s16, %s1916_s16   ;;  %s1466_s15 = sphi %s1539_s15, %s1918_s15   ;;  %s1462_s14 = sphi %s1537_s14, %s1920_s14   ;;  %s1458_s13 = sphi %s1535_s13, %s1919_s13  }
   0xb   : > { %1894 = sst [smem:[#allocation14_spill]] %s1466_s15  ;;  %s1102_s18 = sadd.s32 4294967294, %s1470_s16  }
   0xc   : > { %p75_p0 = scmp.ne.s32.totalorder %s1462_s14, %s1458_s13  ;;  %p1883_p1 = scmp.eq.s32.totalorder %s1556_s17, 0 }
   0xd   : > { %p278_p3 = scmp.eq.s32.totalorder %s1102_s18, 1  ;;  %p1103_p5 = scmp.ge.s32.totalorder %s1470_s16, 1 }
   0xe   : > { %p1565_p4 = por %p1883_p1, %p75_p0  ;;  %p285_p7 = scmp.lt.s32.totalorder %s1470_s16, 3 }
   0xf   : > { %p1570_p6 = por %p278_p3, %p75_p0  ;;  %s1472_s22 = smov [#allocation7]  }
  0x10   : > { %s1895_s19 = scalar_select %p1565_p4, 1, 0 }
  0x11   : > { %s1896_s20 = scalar_select %p1570_p6, 1, 0 }
  0x12   : > { %p1575_p8 = pnand %p1103_p5, %p285_p7  ;;  %s306_s23 = sshll.u32 %s1472_s22, 4  ;;  %s1579_s23 = int_to_ptr.vmem [resolvable:$true] %s306_s23 }
  0x13   : > { %1897 = sst [smem:[#allocation15_spill]] %s1896_s20  ;;  %s1591_s25 = sadd.s32 1, %s1470_s16  }
  0x14   : > { %s1898_s21 = scalar_select %p1575_p8, 1, 0 }
  0x15   : > { %p1236_p9 = pneg %p1575_p8  ;;  %1900 = sst [smem:[#allocation16_spill]] %s1591_s25 }
  0x16   : > { %s62_s26 = sadd.s32 1, %s1466_s15  ;;  %s59_s27 = ssub.s32 %s1470_s16, %s1591_s25 }
  0x17   : > { %p1586_p11 = pnand %p1236_p9, %p1883_p1  ;;  %s1901_s6 = sld [smem:[#allocation18_spill]] }
  0x19   : > { %p1310_p13 = pneg %p1586_p11 }
  0x1d   : > { %s1308_s30 = scalar_lea.hbm %s1901_s6, 128 }
  0x1e   : > { %p1309_p12 = scmp.ne.s32.totalorder %s1901_s6, %s1308_s30  ;;  %p1315_p5 = scmp.lt.u32.totalorder %s1308_s30, %s1901_s6 }
  0x20   : > { %p1311_p0 = pnand %p1310_p13, %p1309_p12 }
  0x22   : > { %p1312_p3 = pneg %p1311_p0 }
  0x24   : > { %p1317_p7 = pnand %p1315_p5, %p1312_p3 }
  0x26   : > { %1320 = shalt.err (!%p1317_p7)
}
  0x27   : > { %s1321_s25 = scalar_lea.vmem %s1579_s23, 128  ;;  %p1329_p2 = scmp.lt.s32.totalorder %s1579_s23, %s1579_s23 }
  0x28   : > { %p1322_p9 = scmp.ne.s32.totalorder %s1579_s23, %s1321_s25  ;;  %p1330_p6 = scmp.lt.s32.totalorder %s1321_s25, %s1321_s25 }
  0x2a   : > { %p1324_p10 = pnand %p1322_p9, %p1310_p13  ;;  %p1331_p4 = por %p1330_p6, %p1329_p2 }
  0x2c   : > { %p1325_p1 = pneg %p1324_p10 }
  0x2e   : > { %p1332_p8 = pnand %p1331_p4, %p1325_p1 }
  0x30   : > { %1335 = shalt.err (!%p1332_p8)
}
  0x31   : > { %s1473_s28 = smov 64   ;;  %s1474_s29 = smov 4  }
  0x32   : > { %1239 = dma.hbm_to_vmem [thread:$0]  (!%p1586_p11), %s1901_s6, 128, %s1579_s23, [#allocation6], %s1473_s28, %s1473_s28, %s1474_s29  }
  0x33   : > { %p60_p2 = scmp.eq.s32.totalorder %s59_s27, 0  ;;  %p69_p1 = scmp.ne.s32.totalorder %s1466_s15, %s1462_s14 }
  0x34   : > { %p70_p4 = scmp.eq.s32.totalorder %s1470_s16, 0  ;;  %p1252_p6 = scmp.lt.s32.totalorder %s1470_s16, 2 }
  0x35   : > { %s1622_s25 = scalar_select %p60_p2, %s1466_s15, %s62_s26  }
  0x36   : > { %p71_p8 = por %p70_p4, %p69_p1  ;;  %p1903_p10 = scmp.eq.s32.totalorder %s1556_s17, 1 }
  0x37   : > { %1902 = sst [smem:[#allocation17_spill]] %s1622_s25  ;;  %s336_s18 = sand.u32 1, %s1466_s15  }
  0x38   : > { %p1626_p12 = por %p1903_p10, %p69_p1  ;;  %s1107_s22 = sshll.u32 %s1470_s16, 6 }
  0x39   : > { %s1632_s20 = sshll.u32 %s336_s18, 2  ;;  %s1637_s23 = scalar_lea.hbm %s1871_s1, %s1107_s22 }
  0x3a   : > { %s1904_s12 = scalar_select %p1626_p12, 1, 0 }
  0x3b   : > { %s340_s26 = scalar_lea.vmem [#allocation2], %s1632_s20  ;;  %p1640_p11 = pnand %p1252_p6, %p71_p8 }
  0x3c   : > { %s347_s27 = sshll.u32 %s340_s26, 4  ;;  %s1649_s13 = scalar_lea.hbm %s1872_s2, %s1107_s22  ;;  %s1644_s27 = int_to_ptr.vmem [resolvable:$true] %s347_s27 }
  0x3d   : > { %s337_s11 = scalar_lea.sflag [#allocation3], %s336_s18  ;;  %s1336_s24 = scalar_lea.hbm %s1637_s23, 64 }
  0x3e   : > { %p1337_p13 = scmp.ne.s32.totalorder %s1637_s23, %s1336_s24  ;;  %p1338_p0 = pneg %p1640_p11 }
  0x3f   : > { %s1341_s25 = scalar_lea.hbm %s1871_s1, 128  ;;  %p1342_p7 = scmp.lt.u32.totalorder %s1637_s23, %s1871_s1 }
  0x40   : > { %p1339_p3 = pnand %p1338_p0, %p1337_p13  ;;  %p1343_p9 = scmp.lt.u32.totalorder %s1341_s25, %s1336_s24 }
  0x41   : > { %p1345_p1 = scmp.lt.u32.totalorder %s1336_s24, %s1637_s23 }
  0x42   : > { %p1340_p5 = pneg %p1339_p3  ;;  %p1344_p2 = por %p1343_p9, %p1342_p7 }
  0x44   : > { %p1346_p4 = por %p1345_p1, %p1344_p2 }
  0x46   : > { %p1347_p6 = pnand %p1346_p4, %p1340_p5 }
  0x48   : > { %1350 = shalt.err (!%p1347_p6)
}
  0x49   : > { %s1351_s18 = scalar_lea.vmem %s1644_s27, 64  ;;  %s1475_s6 = smov [#allocation2]  }
  0x4a   : > { %p1352_p8 = scmp.ne.s32.totalorder %s1644_s27, %s1351_s18  ;;  %s1356_s22 = sshll.u32 %s1475_s6, 4  ;;  %s1357_s22 = int_to_ptr.vmem [resolvable:$false] %s1356_s22 }
  0x4b   : > { %s1358_s10 = scalar_lea.vmem %s1357_s22, 128  ;;  %p1359_p3 = scmp.lt.s32.totalorder %s1644_s27, %s1357_s22 }
  0x4c   : > { %p1354_p10 = pnand %p1352_p8, %p1338_p0  ;;  %p1360_p7 = scmp.lt.s32.totalorder %s1358_s10, %s1351_s18 }
  0x4e   : > { %p1355_p13 = pneg %p1354_p10  ;;  %p1361_p9 = por %p1360_p7, %p1359_p3 }
  0x50   : > { %p1362_p2 = pnand %p1361_p9, %p1355_p13 }
  0x52   : > { %1365 = shalt.err (!%p1362_p2)
}
  0x53   : > { %1243 = dma.hbm_to_vmem [thread:$0]  (!%p1640_p11), %s1637_s23, 64, %s1644_s27, %s337_s11  }
  0x54   : > { %s354_s15 = sand.u32 1, %s1470_s16   ;;  %s358_s25 = scalar_lea.vmem [#allocation5], %s1632_s20 }
  0x55   : > { %s365_s29 = sshll.u32 %s358_s25, 4  ;;  %s355_s30 = scalar_lea.sflag [#allocation6], %s354_s15  ;;  %s366_s29 = int_to_ptr.vmem [resolvable:$true] %s365_s29 }
  0x56   : > { %s1366_s24 = scalar_lea.hbm %s1649_s13, 64  ;;  %s1371_s6 = scalar_lea.hbm %s1872_s2, 128 }
  0x57   : > { %p1367_p5 = scmp.ne.s32.totalorder %s1649_s13, %s1366_s24  ;;  %p1372_p6 = scmp.lt.u32.totalorder %s1649_s13, %s1872_s2 }
  0x58   : > { %p1373_p8 = scmp.lt.u32.totalorder %s1371_s6, %s1366_s24  ;;  %p1375_p13 = scmp.lt.u32.totalorder %s1366_s24, %s1649_s13 }
  0x59   : > { %p1369_p1 = pnand %p1367_p5, %p1338_p0 }
  0x5a   : > { %p1374_p10 = por %p1373_p8, %p1372_p6 }
  0x5b   : > { %p1370_p4 = pneg %p1369_p1 }
  0x5c   : > { %p1376_p3 = por %p1375_p13, %p1374_p10 }
  0x5e   : > { %p1377_p7 = pnand %p1376_p3, %p1370_p4 }
  0x60   : > { %1380 = shalt.err (!%p1377_p7)
}
  0x61   : > { %s1381_s20 = scalar_lea.vmem %s366_s29, 64  ;;  %s1476_s23 = smov [#allocation5]  }
  0x62   : > { %p1382_p9 = scmp.ne.s32.totalorder %s366_s29, %s1381_s20  ;;  %s1386_s27 = sshll.u32 %s1476_s23, 4  ;;  %s1387_s27 = int_to_ptr.vmem [resolvable:$false] %s1386_s27 }
  0x63   : > { %s1388_s11 = scalar_lea.vmem %s1387_s27, 128  ;;  %p1389_p1 = scmp.lt.s32.totalorder %s366_s29, %s1387_s27 }
  0x64   : > { %p1384_p2 = pnand %p1382_p9, %p1338_p0  ;;  %p1390_p12 = scmp.lt.s32.totalorder %s1388_s11, %s1381_s20 }
  0x66   : > { %p1385_p5 = pneg %p1384_p2  ;;  %p1391_p6 = por %p1390_p12, %p1389_p1 }
  0x68   : > { %p1392_p8 = pnand %p1391_p6, %p1385_p5 }
  0x6a   : > { %1395 = shalt.err (!%p1392_p8)
}
  0x6b   : > { %1246 = dma.hbm_to_vmem [thread:$0]  (!%p1640_p11), %s1649_s13, 64, %s366_s29, %s355_s30  }
  0x6c   : > { %p1906_p4 = scmp.ne.s32.totalorder %s1898_s21, 0 }
  0x6d   : > { %s1700_s15 = sand.u32 (!%p1906_p4), 1, %s1462_s14   ;;  %p1907_p0 = scmp.ne.s32.totalorder (!%p1906_p4), %s1895_s19, 0 }
  0x6e   : > { %374 = sbr.rel (%p1906_p4) target bundleno = 1404 (0x57c), region = 60  ;;  %s1111_s25 = sshll.u32 (!%p1906_p4), %s1700_s15, 2 }
  0x6f   : > { %s377_s24 = scalar_lea.sflag (!%p1906_p4), [#allocation3], %s1700_s15  ;;  %s380_s26 = scalar_lea.vmem (!%p1906_p4), [#allocation2], %s1111_s25 }
  0x75   : > { %1441 = dma.done.wait (%p1907_p0), %s377_s24, 64  }
  0x76   : > { %1443 = vsyncadd (%p1907_p0), %s377_s24, 4294967232  ;;  %s385_s28 = sand.u32 1, %s1556_s17   ;;  %s1709_s21 = scalar_lea.vmem [#allocation5], %s1111_s25 }
  0x77   : > { %s386_s13 = scalar_lea.sflag [#allocation6], %s385_s28 }
  0x78   : > { %1445 = dma.done.wait (%p1907_p0), %s386_s13, 64  }
  0x79   : > { %1447 = vsyncadd (%p1907_p0), %s386_s13, 4294967232  ;;  %p1908_p12 = scmp.eq.s32.totalorder %s1556_s17, 0 }
  0x7b   : > { %1449 = dma.done.wait (%p1908_p12), [#allocation6], 128   ;;  %p1909_p11 = pmov %p1908_p12 }
  0x7c   : > { %p439_p10 = scmp.lt.s32.totalorder %s1556_s17, 1  ;;  %v1477_v0 = vmov 0.0   ;;  %vm1478_vm0 = vmmov 0   ;;  %v1292_v1 = vld [vmem:[%s1873_s3] sm:$0xff]   ;;  %v1293_v2 = vld [vmem:[%s1873_s3 + $0x8] sm:$0xff]   ;;  %vm464_vm1 = vcmask 261120   ;;  %v600_v6 = vlaneseq }
  0x7d   : > { %1451 = vsyncadd (%p1909_p11), [#allocation6], 4294967168  ;;  %1170 = vmatprep.subr.bf16.mxu1 %v1477_v0  ;;  %1162 = vmatprep.subr.bf16.mxu0 %v1477_v0  ;;  %v445_v4 = vld [vmem:[%s380_s26] sm:$0xf]  ;;  %vm608_vm2 = vcmask 64512   ;;  %vm628_vm3 = vcmask 1043456  }
  0x7e   : > { %1174 = vmatprep.mubr.msk.bf16.mxu1 %vm1478_vm0, %v1477_v0  ;;  %1166 = vmatprep.mubr.msk.bf16.mxu0 %vm1478_vm0, %v1477_v0  ;;  %s440_s19 = scalar_select %p439_p10, %s1556_s17, 1  ;;  %v1753_v7 = vshrl.u32 %v600_v6, 7  ;;  %v1759_v9 = vld [vmem:[%s1879_s9] sm:$0xf]  ;;  %v624_v30 = vld [vmem:[%s1709_s21] sm:$0xf] }
  0x7f   : > { %1171 = vmatpush3.bf16.msra.mxu1 %v1292_v1  ;;  %1163 = vmatpush3.bf16.msra.mxu0 %v1292_v1  ;;  %v630_v31 = vsel %vm628_vm3, %v624_v30, 0  ;;  %v1294_v41 = vld [vmem:[%s1874_s4] sm:$0xff]   ;;  %v1296_v43 = vld [vmem:[%s1874_s4 + $0x8] sm:$0xff]   ;;  %v1299_v60 = vld [vmem:[#allocation7] sm:$0xff]   ;;  %vm818_vm4 = vcmask 130048   ;;  %s1114_s23 = sshll.u32 %s1700_s15, 3 }
  0x80   : > { %s1115_s29 = sshll.u32 %s440_s19, 3  ;;  %1172 = vmatprep.subr.bf16.mxu1 %v1477_v0  ;;  %1164 = vmatprep.subr.bf16.mxu0 %v1477_v0  ;;  %v602_v8 = vsub.s32 0, %v1753_v7  ;;  %v1295_v42 = vld [vmem:[%s1875_s5] sm:$0xff]   ;;  %v1297_v44 = vld [vmem:[%s1875_s5 + $0x8] sm:$0xff]   ;;  %v684_v61 = vsub.s32 1, %v1753_v7  ;;  %v748_v62 = vsub.s32 2, %v1753_v7 }
  0x81   : > { %s442_s6 = scalar_lea.vmem %s1870_s0, %s1115_s29  ;;  %v1298_v59 = vld [vmem:[%s1877_s7] sm:$0xff]   ;;  %v970_v30 = vsub.s32 3, %v1753_v7  ;;  %s1136_s27 = sshll.u32 %s1556_s17, 7 }
  0x82   : > { %v1736_v3 = vld [vmem:[%s442_s6] sm:$0xff]  ;;  %v603_v10 = vrot.slane %v1759_v9, %v602_v8  ;;  %v685_v63 = vrot.slane %v1759_v9, %v684_v61  ;;  %v749_v1 = vrot.slane %v1759_v9, %v748_v62  ;;  %s438_s11 = scalar_lea.vmem [#allocation8], %s1114_s23  ;;  %s1910_s28 = sld [smem:[#allocation19_spill]] }
  0x83   : > { %v1742_v5 = vpack.c.bf16 %v1736_v3, %v1736_v3  ;;  %1173 = vmatpush3.bf16.msra.mxu1 %v1293_v2  ;;  %1165 = vmatpush3.bf16.msra.mxu0 %v1293_v2  ;;  %s988_s25 = sshll.u32 %s438_s11, 4  ;;  %s975_s17 = scalar_lea.sflag [#allocation4], %s1700_s15  ;;  %s1827_s25 = int_to_ptr.vmem [resolvable:$true] %s988_s25 }
  0x84   : > { %1178 = vmatprep.subr.bf16.mxu0 %v1477_v0  ;;  %1184 = vmatprep.subr.bf16.mxu1 %v1477_v0  ;;  %s1396_s21 = scalar_lea.vmem %s1827_s25, 128  ;;  %p1911_p3 = scmp.ne.s32.totalorder %s1904_s12, 0 }
  0x85   : > { %p1397_p13 = scmp.ne.s32.totalorder %s1827_s25, %s1396_s21  ;;  %s1479_s19 = smov [#allocation8]  }
  0x86   : > { %1175 = vmatmul.mubr.msk.bf16.vlgmr.msra.gmra.mrb[0].mxu1 %vm464_vm1, %v445_v4  ;;  %1167 = vmatmul.mubr.msk.bf16.vlgmr.msra.gmra.mrb[0].mxu0 %vm464_vm1, %v1742_v5  ;;  %s1400_s29 = sshll.u32 %s1479_s19, 4  ;;  %s1401_s29 = int_to_ptr.vmem [resolvable:$false] %s1400_s29 }
  0x87   : > { %1180 = vmatprep.mubr.msk.bf16.mxu0 %vm1478_vm0, %v1477_v0  ;;  %1186 = vmatprep.mubr.msk.bf16.mxu1 %vm1478_vm0, %v1477_v0  ;;  %p1398_p7 = pnand %p1397_p13, %p1911_p3  ;;  %s1402_s30 = scalar_lea.vmem %s1401_s29, 256 }
  0x88   : > { %1185 = vmatpush3.bf16.msra.mxu1 %v630_v31  ;;  %s1825_s13 = scalar_lea.hbm %s1910_s28, %s1136_s27  ;;  %p1403_p2 = scmp.lt.s32.totalorder %s1827_s25, %s1401_s29 }
  0x89   : > { %1198 = vmatprep.subr.bf16.mxu1 %v1477_v0  ;;  %p1399_p9 = pneg %p1398_p7  ;;  %p1404_p5 = scmp.lt.s32.totalorder %s1402_s30, %s1396_s21 }
  0x8b   : > { %p1405_p1 = por %p1404_p5, %p1403_p2 }
  0x8d   : > { %p1406_p6 = pnand %p1405_p1, %p1399_p9 }
 0x159   : > { %v546_v11 = vpop.f32.mrb[0].mxu1  ;;  %v502_v12 = vpop.f32.mrb[0].mxu0 }
 0x15a   : > { %v553_v13 = vpack.c.bf16 %v546_v11, %v546_v11  ;;  %v1176_v14 = vpop.f32.mrb[1].mxu1  ;;  %v508_v15 = vmul.f32 0.17677669, %v502_v12  ;;  %v1168_v16 = vpop.f32.mrb[1].mxu0 }
 0x15b   : > { %v549_v17 = vpop.f32.mrb[2].mxu1  ;;  %v505_v18 = vpop.f32.mrb[2].mxu0 }
 0x15c   : > { %v558_v19 = vsel %vm464_vm1, %v553_v13, 0  ;;  %v1177_v20 = vpop.f32.mrb[3].mxu1  ;;  %v1169_v21 = vpop.f32.mrb[3].mxu0  ;;  %v604_v22 = vmul.f32 %v603_v10, %v508_v15  ;;  %v552_v24 = vpack.c.bf16 %v508_v15, %v508_v15  ;;  %v1300_v17 = vld [vmem:[%s1878_s8] sm:$0xff]  }
 0x15d   : > { %1179 = vmatpush3.bf16.xpose.msra.mxu0 %v558_v19  ;;  %v1301_v20 = vld [vmem:[%s1878_s8 + $0x8] sm:$0xff]  }
 0x15e   : > { %v605_v23 = vsel %vm464_vm1, %v604_v22, 0.0  ;;  %1190 = vmatprep.subr.bf16.mxu0 %v1477_v0 }
 0x15f   : > { %606 = vadd.xlane.f32.xlu0 %v605_v23 }
 0x164   : > { %1181 = vmatmul.mubr.msk.bf16.vlgmr.msra.gmra.mrb[4].mxu0 %vm464_vm1, %v552_v24 }
 0x165   : > { %1194 = vmatprep.mubr.msk.bf16.mxu0 %vm1478_vm0, %v1477_v0  ;;  %1191 = vmatpush3.bf16.msra.mxu0 %v1294_v41 }
 0x166   : > { %1192 = vmatprep.subr.bf16.mxu0 %v1477_v0 }
 0x169   : > { %1193 = vmatpush3.bf16.msra.mxu0 %v1296_v43 }
 0x16a   : > { %1206 = vmatprep.subr.bf16.mxu0 %v1477_v0 }
 0x1ec   : > { %v607_v32 = vpop.xlane.xlu0 %606 }
 0x237   : > { %v594_v25 = vpop.f32.mrb[4].mxu0 }
 0x238   : > { %v1182_v26 = vpop.f32.mrb[5].mxu0  ;;  %v609_v27 = vsel %vm608_vm2, %v594_v25, -inf }
 0x239   : > { %610 = vmax.xlane.f32.xlu0 %v609_v27  ;;  %v597_v28 = vpop.f32.mrb[6].mxu0 }
 0x23a   : > { %v1183_v29 = vpop.f32.mrb[7].mxu0 }
 0x2c6   : > { %v611_v33 = vpop.xlane.xlu0 %610 }
 0x2c7   : > { %v612_v34 = vmax.f32 %v611_v33, %v607_v32 }
 0x2c9   : > { %v613_v35 = vsub.f32 %v594_v25, %v612_v34  ;;  %v616_v36 = vsub.f32 %v607_v32, %v612_v34 }
 0x2cb   : > { %v614_v37 = vmul.f32 1.442695, %v613_v35  ;;  %v617_v45 = vmul.f32 1.442695, %v616_v36 }
 0x2cd   : > { %1302 = vpow2.f32 %v614_v37 }
 0x2ce   : > { %1304 = vpow2.f32 %v617_v45 }
 0x2d7   : > { %v1303_v38 = vpop.eup %1302 }
 0x2d8   : > { %v619_v39 = vsel %vm608_vm2, %v1303_v38, 0.0  ;;  %v623_v40 = vpack.c.bf16 %v1303_v38, %v1303_v38  ;;  %v1305_v47 = vpop.eup %1304 }
 0x2d9   : > { %620 = vadd.xlane.f32.xlu1 %v619_v39 }
 0x2da   : > { %1187 = vmatmul.mubr.msk.bf16.vlgmr.msra.gmra.mrb[4].mxu1 %vm608_vm2, %v623_v40 }
 0x2db   : > { %1202 = vmatprep.mubr.msk.bf16.mxu1 %vm1478_vm0, %v1477_v0  ;;  %1199 = vmatpush3.bf16.msra.mxu1 %v1295_v42 }
 0x2dc   : > { %1200 = vmatprep.subr.bf16.mxu1 %v1477_v0 }
 0x2df   : > { %1201 = vmatpush3.bf16.msra.mxu1 %v1297_v44 }
 0x2e0   : > { %1212 = vmatprep.subr.bf16.mxu1 %v1477_v0 }
 0x366   : > { %v621_v46 = vpop.xlane.xlu1 %620 }
 0x367   : > { %v622_v48 = vadd.f32 %v1305_v47, %v621_v46 }
 0x369   : > { %1306 = vrcp.f32 %v622_v48 }
 0x373   : > { %v1307_v49 = vpop.eup %1306 }
 0x3ad   : > { %v666_v50 = vpop.f32.mrb[4].mxu1 }
 0x3ae   : > { %v673_v51 = vmul.f32 %v1307_v49, %v666_v50  ;;  %v1188_v52 = vpop.f32.mrb[5].mxu1 }
 0x3af   : > { %v669_v53 = vpop.f32.mrb[6].mxu1 }
 0x3b0   : > { %v674_v54 = vmul.f32 %v673_v51, %v1736_v3  ;;  %v676_v55 = vsub.f32 %v1736_v3, %v673_v51  ;;  %v1189_v56 = vpop.f32.mrb[7].mxu1 }
 0x3b2   : > { %v675_v57 = vpack.c.bf16 %v674_v54, %v674_v54  ;;  %v677_v58 = vpack.c.bf16 %v676_v55, %v676_v55 }
 0x3b4   : > { %1195 = vmatmul.mubr.msk.bf16.vlgmr.msra.gmra.mrb[8].mxu0 %vm464_vm1, %v675_v57  ;;  %1203 = vmatmul.mubr.msk.bf16.vlgmr.msra.gmra.mrb[8].mxu1 %vm464_vm1, %v677_v58 }
 0x3b5   : > { %1208 = vmatprep.mubr.msk.bf16.mxu0 %vm1478_vm0, %v1477_v0  ;;  %1214 = vmatprep.mubr.msk.bf16.mxu1 %vm1478_vm0, %v1477_v0 }
 0x3b6   : > { %1207 = vmatpush3.bf16.msra.mxu0 %v1298_v59  ;;  %1213 = vmatpush3.bf16.msra.mxu1 %v1299_v60 }
 0x3b7   : > { %1218 = vmatprep.subr.bf16.mxu0 %v1477_v0 }
 0x487   : > { %v735_v2 = vpop.f32.mrb[8].mxu0  ;;  %v799_v3 = vpop.f32.mrb[8].mxu1 }
 0x488   : > { %v736_v4 = vadd.f32 %v735_v2, %v685_v63  ;;  %v800_v6 = vadd.f32 %v799_v3, %v749_v1  ;;  %v1196_v8 = vpop.f32.mrb[9].mxu0  ;;  %v1204_v10 = vpop.f32.mrb[9].mxu1 }
 0x489   : > { %v738_v11 = vpop.f32.mrb[10].mxu0  ;;  %v802_v12 = vpop.f32.mrb[10].mxu1 }
 0x48a   : > { %v741_v13 = vmax.f32 %v736_v4, 0.0  ;;  %v805_v14 = vmax.f32 %v800_v6, 0.0  ;;  %v1197_v15 = vpop.f32.mrb[11].mxu0  ;;  %v1205_v16 = vpop.f32.mrb[11].mxu1 }
 0x48c   : > { %v806_v18 = vpack.c.bf16 %v741_v13, %v741_v13  ;;  %v809_v19 = vpack.c.bf16 %v805_v14, %v805_v14 }
 0x48e   : > { %1209 = vmatmul.mubr.msk.bf16.vlgmr.msra.gmra.mrb[12].mxu0 %vm818_vm4, %v809_v19  ;;  %1215 = vmatmul.mubr.msk.bf16.vlgmr.msra.gmra.mrb[12].mxu1 %vm818_vm4, %v806_v18 }
 0x48f   : > { %1219 = vmatpush3.bf16.msra.mxu0 %v1300_v17  ;;  %1222 = vmatprep.mubr.msk.bf16.mxu0 %vm1478_vm0, %v1477_v0 }
 0x490   : > { %1220 = vmatprep.subr.bf16.mxu0 %v1477_v0  ;;  %v971_v0 = vrot.slane %v1759_v9, %v970_v30 }
 0x493   : > { %1221 = vmatpush3.bf16.msra.mxu0 %v1301_v20 }
 0x496   : > { %1223 = vmatmul.mubr.msk.bf16.vlgmr.msra.gmra.mrb[16].mxu0 %vm464_vm1, %v1742_v5 }
 0x561   : > { %v856_v21 = vpop.f32.mrb[12].mxu0  ;;  %v905_v22 = vpop.f32.mrb[12].mxu1 }
 0x562   : > { %v906_v23 = vadd.f32 %v905_v22, %v856_v21  ;;  %v1210_v24 = vpop.f32.mrb[13].mxu0  ;;  %v1216_v25 = vpop.f32.mrb[13].mxu1 }
 0x563   : > { %v859_v26 = vpop.f32.mrb[14].mxu0  ;;  %v908_v27 = vpop.f32.mrb[14].mxu1 }
 0x564   : > { %v1211_v28 = vpop.f32.mrb[15].mxu0  ;;  %v1217_v29 = vpop.f32.mrb[15].mxu1 }
 0x569   : > { %v961_v31 = vpop.f32.mrb[16].mxu0 }
 0x56a   : > { %v967_v5 = vadd.f32 %v961_v31, %v906_v23  ;;  %v1224_v32 = vpop.f32.mrb[17].mxu0 }
 0x56b   : > { %v964_v33 = vpop.f32.mrb[18].mxu0 }
 0x56c   : > { %v972_v34 = vadd.f32 %v971_v0, %v967_v5  ;;  %v1225_v35 = vpop.f32.mrb[19].mxu0 }
 0x56e   : > { %973 = vst.msk [vmem:[%s438_s11] sm:$0xff] %vm464_vm1, %v972_v34 }
 0x56f   : > { %1409 = shalt.err (!%p1406_p6)
}
 0x570   : > { %s1410_s15 = scalar_lea.hbm %s1825_s13, 128  ;;  %s1414_s22 = scalar_lea.hbm %s1910_s28, 256 }
 0x571   : > { %p1411_p8 = scmp.ne.s32.totalorder %s1825_s13, %s1410_s15  ;;  %p1415_p12 = scmp.lt.u32.totalorder %s1825_s13, %s1910_s28 }
 0x572   : > { %p1416_p11 = scmp.lt.u32.totalorder %s1414_s22, %s1410_s15  ;;  %p1418_p13 = scmp.lt.u32.totalorder %s1410_s15, %s1825_s13 }
 0x573   : > { %p1412_p4 = pnand %p1411_p8, %p1911_p3 }
 0x574   : > { %p1417_p10 = por %p1416_p11, %p1415_p12 }
 0x575   : > { %p1413_p0 = pneg %p1412_p4 }
 0x576   : > { %p1419_p7 = por %p1418_p13, %p1417_p10 }
 0x578   : > { %p1420_p9 = pnand %p1419_p7, %p1413_p0 }
 0x57a   : > { %1423 = shalt.err (!%p1420_p9)
}
 0x57b   : > { %1234 = dma.vmem_to_hbm [thread:$0]  (%p1911_p3), %s1827_s25, 128, %s1825_s13, %s975_s17  }
 0x57c PF: > { %s1912_s23 = sld [smem:[#allocation13_spill]]  ;;  %s1913_s27 = sld [smem:[#allocation15_spill]] }
 0x57d   : > { %p1915_p5 = scmp.ge.s32.totalorder %s1470_s16, 2 }
 0x582   : > { %s1000_s11 = sand.u32 1, %s1912_s23   ;;  %p1914_p2 = scmp.ne.s32.totalorder %s1913_s27, 0 }
 0x583   : > { %s1001_s24 = scalar_lea.sflag [#allocation4], %s1000_s11 }
 0x584   : > { %p1248_p1 = pnand %p1915_p5, %p1914_p2 }
 0x586   : > { %1453 = dma.done.wait (!%p1248_p1), %s1001_s24, 128  }
 0x587   : > { %1455 = vsyncadd (!%p1248_p1), %s1001_s24, 4294967168  ;;  %s1916_s16 = sld [smem:[#allocation16_spill]]  ;;  %s1917_s26 = sld [smem:[#allocation14_spill]] }
 0x588   : > { %s1918_s15 = sld [smem:[#allocation17_spill]]  ;;  %s1919_s13 = smov %s1462_s14 }
 0x58d   : > { %p26_p6 = scmp.ge.s32.totalorder %s1916_s16, 4   ;;  %s1920_s14 = smov %s1917_s26 }
 0x58f   :  { %28 = sbr.rel (!%p26_p6) target bundleno = 10 (0xa), region = 125 }
 0x596   :  { %1006 = vsyncpa [#allocation3], 1 }
 0x597   :  { %1008 = vsyncpa [#allocation3 + $0x1], 1 }
 0x598   :  { %1009 = vsyncpa [#allocation6], 1 }
 0x599   :  { %1011 = vsyncpa [#allocation6 + $0x1], 1 }
 0x59a   :  { %1012 = vsyncpa [#allocation4], 1 }
 0x59b   :  { %1014 = vsyncpa [#allocation4 + $0x1], 1 }

</bundles_post_ra>
